<compile_context>
chip_gen: v7x
topology: tpu7x:2x2x1
jax: 0.10.0
libtpu: 0.0.40
codegen_flags: <defaults>
</compile_context>

<pallas_src>
import functools

import jax
import jax.numpy as jnp
from jax import lax
from jax.experimental import pallas as pl
from jax.experimental.pallas import tpu as pltpu


_VMEM_LIMIT_BYTES = 40 * 1024 * 1024   # > scoped defaults, < v7x physical 64 MiB
_ONEHOT_BUDGET_BYTES = 6 * 1024 * 1024


def _silu(v):
    return v * jax.nn.sigmoid(v)


# --------------------------------------------------------------------------
# Kernel 1: 4-layer MLP over the N relative-position scalars.
# Emits the table pre-transposed as (heads_pad, N) so the gather kernel's
# matmul contracts a contiguous dim with no per-tile transpose.
# --------------------------------------------------------------------------
def _mlp_table_kernel(x_ref, w0_ref, b0_ref, w1_ref, b1_ref,
                      w2_ref, b2_ref, w3t_ref, b3t_ref, table_ref):
    x = x_ref[...]                                            # (N, 1) f32
    # Linear(1, dim) is a rank-1 outer product -> broadcast multiply.
    h = _silu(x * w0_ref[...] + b0_ref[...])                  # (N, dim)
    h = _silu(jnp.dot(h, w1_ref[...],
                      preferred_element_type=jnp.float32) + b1_ref[...])
    h = _silu(jnp.dot(h, w2_ref[...],
                      preferred_element_type=jnp.float32) + b2_ref[...])
    # (heads_pad, N) = w3t @ h^T + b3t   (w3t is (heads_pad, dim))
    table_ref[...] = lax.dot_general(
        w3t_ref[...], h,
        dimension_numbers=(((1,), (1,)), ((), ())),
        preferred_element_type=jnp.float32) + b3t_ref[...]


# --------------------------------------------------------------------------
# Kernel 2: gather x[rel_pos] + 'i j h -> h i j', fused as a one-hot matmul,
# tiled over the flattened output axis p = ii * n_j + jj.
#   out[h, p] = table_T[h, rel(p)]
# --------------------------------------------------------------------------
def _gather_kernel(table_ref, out_ref, *, n_pos, n_j, si, sj, offset, tp):
    p0 = pl.program_id(0) * tp
    # Per-COLUMN index math only (1, TP) — not replicated across the N rows.
    col = lax.broadcasted_iota(jnp.int32, (1, tp), 1) + p0    # (1, TP)
    ii = col // n_j
    jj = col - ii * n_j
    rel = ii * si - jj * sj + offset                          # (1, TP)
    # One-hot via broadcast compare: (N, 1) == (1, TP) -> (N, TP).
    row = lax.broadcasted_iota(jnp.int32, (n_pos, 1), 0)      # (N, 1)
    onehot = (row == rel).astype(jnp.float32)                 # (N, TP)
    # (heads_pad, TP) = table_T @ onehot  (exact selection in f32).
    out_ref[...] = jnp.dot(table_ref[...], onehot,
                           preferred_element_type=jnp.float32)


def _full_spec(shape):
    nd = len(shape)
    return pl.BlockSpec(shape, lambda g, _nd=nd: (0,) * _nd)


def init_params(key, dim, heads):
    """Deterministic synthetic parameters (layers=3 => 4 linear layers)."""
    ks = jax.random.split(key, 8)
    s_in = 0.5
    s_h = 1.0 / jnp.sqrt(dim)
    w0 = jax.random.normal(ks[0], (1, dim), jnp.float32) * s_in
    b0 = jax.random.normal(ks[1], (1, dim), jnp.float32) * 0.1
    w1 = jax.random.normal(ks[2], (dim, dim), jnp.float32) * s_h
    b1 = jax.random.normal(ks[3], (1, dim), jnp.float32) * 0.1
    w2 = jax.random.normal(ks[4], (dim, dim), jnp.float32) * s_h
    b2 = jax.random.normal(ks[5], (1, dim), jnp.float32) * 0.1
    w3 = jax.random.normal(ks[6], (dim, heads), jnp.float32) * s_h
    b3 = jax.random.normal(ks[7], (1, heads), jnp.float32) * 0.1
    return (w0, b0, w1, b1, w2, b2, w3, b3)


def _problem_constants(i, j, usi, usj):
    usr = int(max(usi, usj))
    seql = i // usi
    assert i % usi == 0 and i // usi == seql
    assert j % usj == 0 and j // usj == seql
    assert usr % usi == 0 and usr % usj == 0
    si = usr // usi
    sj = usr // usj
    offset = seql * usr - 1
    n_pos = 2 * seql * usr - 1
    x = (jnp.arange(-seql * usr + 1, seql * usr, dtype=jnp.float32)
         / float(usr)).reshape(n_pos, 1)
    return x, n_pos, si, sj, offset


def _pick_tile_p(n_pos, p_pad128):
    # Keep the (N, TP) f32 one-hot slab around <= ~6 MiB so the working set
    # (weights + table + one-hot + compare temps + double-buffered output)
    # fits comfortably in v7x's 64 MiB VMEM and under v5e's scoped budget.
    tp = (_ONEHOT_BUDGET_BYTES // (4 * n_pos)) // 128 * 128
    tp = max(128, min(4096, tp))
    return min(tp, p_pad128)


def relative_position_bias(params, i, j, usi=1, usj=1, *, tile_p=None):
    """Pallas forward.  Returns (heads, i, j) float32, like the PyTorch module."""
    x, n_pos, si, sj, offset = _problem_constants(i, j, usi, usj)
    w0, b0, w1, b1, w2, b2, w3, b3 = params
    dim = w0.shape[1]
    heads = w3.shape[1]
    heads_pad = ((heads + 7) // 8) * 8

    # Pre-transpose / pad the last linear layer so the kernel emits the table
    # as (heads_pad, N) directly (padded head rows are zero and sliced off).
    w3t = jnp.zeros((heads_pad, dim), jnp.float32).at[:heads, :].set(w3.T)
    b3t = jnp.zeros((heads_pad, 1), jnp.float32).at[:heads, :].set(b3.T)

    # ---- kernel 1: MLP table (runs once) ---------------------------------
    mlp_args = (x, w0, b0, w1, b1, w2, b2, w3t, b3t)
    table = pl.pallas_call(
        _mlp_table_kernel,
        grid=(1,),
        in_specs=[_full_spec(a.shape) for a in mlp_args],
        out_specs=_full_spec((heads_pad, n_pos)),
        out_shape=jax.ShapeDtypeStruct((heads_pad, n_pos), jnp.float32),
        compiler_params=pltpu.CompilerParams(
            dimension_semantics=("arbitrary",),
            vmem_limit_bytes=_VMEM_LIMIT_BYTES),
    )(*mlp_args)

    # ---- kernel 2: tiled gather + transpose ------------------------------
    p_total = i * j
    p_pad128 = pl.cdiv(p_total, 128) * 128
    if tile_p is None:
        tp = _pick_tile_p(n_pos, p_pad128)
    else:
        tp = min(max(128, (tile_p // 128) * 128), p_pad128)
    grid_p = pl.cdiv(p_pad128, tp)
    p_pad = grid_p * tp

    kernel = functools.partial(_gather_kernel, n_pos=n_pos, n_j=j,
                               si=si, sj=sj, offset=offset, tp=tp)
    out2d = pl.pallas_call(
        kernel,
        grid=(grid_p,),
        in_specs=[pl.BlockSpec((heads_pad, n_pos), lambda p: (0, 0))],
        out_specs=pl.BlockSpec((heads_pad, tp), lambda p: (0, p)),
        out_shape=jax.ShapeDtypeStruct((heads_pad, p_pad), jnp.float32),
        compiler_params=pltpu.CompilerParams(
            dimension_semantics=("parallel",),
            vmem_limit_bytes=_VMEM_LIMIT_BYTES),
    )(table)

    return out2d[:heads, :p_total].reshape(heads, i, j)


def relative_position_bias_ref(params, i, j, usi=1, usj=1):
    """Pure-JAX reference matching the PyTorch forward exactly."""
    x, _, si, sj, offset = _problem_constants(i, j, usi, usj)
    w0, b0, w1, b1, w2, b2, w3, b3 = params
    h = jax.nn.silu(x @ w0 + b0)
    h = jax.nn.silu(h @ w1 + b1)
    h = jax.nn.silu(h @ w2 + b2)
    table = h @ w3 + b3                                       # (N, heads)
    i_pos = jnp.arange(i) * si
    j_pos = jnp.arange(j) * sj
    rel_pos = i_pos[:, None] - j_pos[None, :] + offset        # (i, j)
    out = table[rel_pos]                                      # (i, j, heads)
    return jnp.transpose(out, (2, 0, 1))                      # (heads, i, j)


if __name__ == "__main__":
    dim, heads = 32, 4
    params = init_params(jax.random.PRNGKey(0), dim, heads)

    # case 1: i = j = 16, usi = usj = 1  (seql = 16, N = 31), single tile
    out1 = jax.block_until_ready(relative_position_bias(params, 16, 16, 1, 1))
    ref1 = relative_position_bias_ref(params, 16, 16, 1, 1)
    assert out1.shape == (heads, 16, 16)
    assert jnp.allclose(out1, ref1, atol=1e-4, rtol=1e-4)

    # case 2: mixed upsampling rates: i=16 (usi=2), j=8 (usj=1)  (seql=8, usr=2)
    out2 = jax.block_until_ready(relative_position_bias(params, 16, 8, 2, 1))
    ref2 = relative_position_bias_ref(params, 16, 8, 2, 1)
    assert out2.shape == (heads, 16, 8)
    assert jnp.allclose(out2, ref2, atol=1e-4, rtol=1e-4)

    # case 3: same as case 1 but force TP=128 -> multi-tile grid path
    out3 = jax.block_until_ready(
        relative_position_bias(params, 16, 16, 1, 1, tile_p=128))
    assert out3.shape == (heads, 16, 16)
    assert jnp.allclose(out3, ref1, atol=1e-4, rtol=1e-4)

    print("KERNEL_OK")
</pallas_src>

<mosaic_0001>
module attributes {stable_mosaic.version = 11 : i64} {
  func.func @_mlp_table_kernel(%arg0: i32, %arg1: memref<31x1xf32, #tpu.memory_space<vmem>>, %arg2: memref<1x32xf32, #tpu.memory_space<vmem>>, %arg3: memref<1x32xf32, #tpu.memory_space<vmem>>, %arg4: memref<32x32xf32, #tpu.memory_space<vmem>>, %arg5: memref<1x32xf32, #tpu.memory_space<vmem>>, %arg6: memref<32x32xf32, #tpu.memory_space<vmem>>, %arg7: memref<1x32xf32, #tpu.memory_space<vmem>>, %arg8: memref<8x32xf32, #tpu.memory_space<vmem>>, %arg9: memref<8x1xf32, #tpu.memory_space<vmem>>, %arg10: memref<8x31xf32, #tpu.memory_space<vmem>>) attributes {dimension_semantics = [#tpu.dimension_semantics<arbitrary>], iteration_bounds = array<i64: 1>, scalar_prefetch = 0 : i64, scratch_operands = 0 : i64, tpu.core_type = #tpu.core_type<tc>, window_params = [{pipeline_mode = #tpu.pipeline_mode<synchronous>, transform_indices = @transform_0, window_bounds = array<i64: 31, 1>}, {pipeline_mode = #tpu.pipeline_mode<synchronous>, transform_indices = @transform_1, window_bounds = array<i64: 1, 32>}, {pipeline_mode = #tpu.pipeline_mode<synchronous>, transform_indices = @transform_2, window_bounds = array<i64: 1, 32>}, {pipeline_mode = #tpu.pipeline_mode<synchronous>, transform_indices = @transform_3, window_bounds = array<i64: 32, 32>}, {pipeline_mode = #tpu.pipeline_mode<synchronous>, transform_indices = @transform_4, window_bounds = array<i64: 1, 32>}, {pipeline_mode = #tpu.pipeline_mode<synchronous>, transform_indices = @transform_5, window_bounds = array<i64: 32, 32>}, {pipeline_mode = #tpu.pipeline_mode<synchronous>, transform_indices = @transform_6, window_bounds = array<i64: 1, 32>}, {pipeline_mode = #tpu.pipeline_mode<synchronous>, transform_indices = @transform_7, window_bounds = array<i64: 8, 32>}, {pipeline_mode = #tpu.pipeline_mode<synchronous>, transform_indices = @transform_8, window_bounds = array<i64: 8, 1>}, {pipeline_mode = #tpu.pipeline_mode<synchronous>, transform_indices = @transform_9, window_bounds = array<i64: 8, 31>}]} {
    %c0 = arith.constant 0 : index
    %c0_0 = arith.constant 0 : index
    %0 = vector.load %arg1[%c0, %c0_0] : memref<31x1xf32, #tpu.memory_space<vmem>>, vector<31x1xf32>
    %c0_1 = arith.constant 0 : index
    %c0_2 = arith.constant 0 : index
    %1 = vector.load %arg2[%c0_1, %c0_2] : memref<1x32xf32, #tpu.memory_space<vmem>>, vector<1x32xf32>
    %2 = vector.broadcast %0 : vector<31x1xf32> to vector<31x32xf32>
    %3 = vector.broadcast %1 : vector<1x32xf32> to vector<31x32xf32>
    %4 = arith.mulf %2, %3 : vector<31x32xf32>
    %c0_3 = arith.constant 0 : index
    %c0_4 = arith.constant 0 : index
    %5 = vector.load %arg3[%c0_3, %c0_4] : memref<1x32xf32, #tpu.memory_space<vmem>>, vector<1x32xf32>
    %6 = vector.broadcast %5 : vector<1x32xf32> to vector<31x32xf32>
    %7 = arith.addf %4, %6 : vector<31x32xf32>
    %8 = arith.negf %7 : vector<31x32xf32>
    %9 = math.exp %8 : vector<31x32xf32>
    %cst = arith.constant 1.000000e+00 : f32
    %10 = vector.broadcast %cst : f32 to vector<31x32xf32>
    %11 = arith.addf %10, %9 : vector<31x32xf32>
    %12 = arith.divf %10, %11 : vector<31x32xf32>
    %13 = arith.mulf %7, %12 : vector<31x32xf32>
    %c0_5 = arith.constant 0 : index
    %c0_6 = arith.constant 0 : index
    %14 = vector.load %arg4[%c0_5, %c0_6] : memref<32x32xf32, #tpu.memory_space<vmem>>, vector<32x32xf32>
    %cst_7 = arith.constant dense<0.000000e+00> : vector<31x32xf32>
    %15 = tpu.matmul %13, %14, %cst_7 {dimension_numbers = #tpu.dot_dimension_numbers<[1], [0], [0], [1], [0, 0, 1, 1], [], []>} : vector<31x32xf32>, vector<32x32xf32>, vector<31x32xf32> -> vector<31x32xf32>
    %c0_8 = arith.constant 0 : index
    %c0_9 = arith.constant 0 : index
    %16 = vector.load %arg5[%c0_8, %c0_9] : memref<1x32xf32, #tpu.memory_space<vmem>>, vector<1x32xf32>
    %17 = vector.broadcast %16 : vector<1x32xf32> to vector<31x32xf32>
    %18 = arith.addf %15, %17 : vector<31x32xf32>
    %19 = arith.negf %18 : vector<31x32xf32>
    %20 = math.exp %19 : vector<31x32xf32>
    %cst_10 = arith.constant 1.000000e+00 : f32
    %21 = vector.broadcast %cst_10 : f32 to vector<31x32xf32>
    %22 = arith.addf %21, %20 : vector<31x32xf32>
    %23 = arith.divf %21, %22 : vector<31x32xf32>
    %24 = arith.mulf %18, %23 : vector<31x32xf32>
    %c0_11 = arith.constant 0 : index
    %c0_12 = arith.constant 0 : index
    %25 = vector.load %arg6[%c0_11, %c0_12] : memref<32x32xf32, #tpu.memory_space<vmem>>, vector<32x32xf32>
    %cst_13 = arith.constant dense<0.000000e+00> : vector<31x32xf32>
    %26 = tpu.matmul %24, %25, %cst_13 {dimension_numbers = #tpu.dot_dimension_numbers<[1], [0], [0], [1], [0, 0, 1, 1], [], []>} : vector<31x32xf32>, vector<32x32xf32>, vector<31x32xf32> -> vector<31x32xf32>
    %c0_14 = arith.constant 0 : index
    %c0_15 = arith.constant 0 : index
    %27 = vector.load %arg7[%c0_14, %c0_15] : memref<1x32xf32, #tpu.memory_space<vmem>>, vector<1x32xf32>
    %28 = vector.broadcast %27 : vector<1x32xf32> to vector<31x32xf32>
    %29 = arith.addf %26, %28 : vector<31x32xf32>
    %30 = arith.negf %29 : vector<31x32xf32>
    %31 = math.exp %30 : vector<31x32xf32>
    %cst_16 = arith.constant 1.000000e+00 : f32
    %32 = vector.broadcast %cst_16 : f32 to vector<31x32xf32>
    %33 = arith.addf %32, %31 : vector<31x32xf32>
    %34 = arith.divf %32, %33 : vector<31x32xf32>
    %35 = arith.mulf %29, %34 : vector<31x32xf32>
    %c0_17 = arith.constant 0 : index
    %c0_18 = arith.constant 0 : index
    %36 = vector.load %arg8[%c0_17, %c0_18] : memref<8x32xf32, #tpu.memory_space<vmem>>, vector<8x32xf32>
    %cst_19 = arith.constant dense<0.000000e+00> : vector<8x31xf32>
    %37 = tpu.matmul %36, %35, %cst_19 {dimension_numbers = #tpu.dot_dimension_numbers<[1], [1], [0], [0], [0, 0, 1, 0], [], []>} : vector<8x32xf32>, vector<31x32xf32>, vector<8x31xf32> -> vector<8x31xf32>
    %c0_20 = arith.constant 0 : index
    %c0_21 = arith.constant 0 : index
    %38 = vector.load %arg9[%c0_20, %c0_21] : memref<8x1xf32, #tpu.memory_space<vmem>>, vector<8x1xf32>
    %39 = vector.broadcast %38 : vector<8x1xf32> to vector<8x31xf32>
    %40 = arith.addf %37, %39 : vector<8x31xf32>
    %c0_22 = arith.constant 0 : index
    %c0_23 = arith.constant 0 : index
    %41 = vector.load %arg10[%c0_22, %c0_23] : memref<8x31xf32, #tpu.memory_space<vmem>>, vector<8x31xf32>
    tpu.vector_store %arg10[%c0_22, %c0_23], %40 {strides = array<i32>} : memref<8x31xf32, #tpu.memory_space<vmem>>, vector<8x31xf32>,
    return
  }
  func.func @transform_0(%arg0: i32) -> (i32, i32) {
    %c0_i32 = arith.constant 0 : i32
    %c0_i32_0 = arith.constant 0 : i32
    %c0_i32_1 = arith.constant 0 : i32
    return %c0_i32, %c0_i32_0 : i32, i32
  }
  func.func @transform_1(%arg0: i32) -> (i32, i32) {
    %c0_i32 = arith.constant 0 : i32
    %c0_i32_0 = arith.constant 0 : i32
    %c0_i32_1 = arith.constant 0 : i32
    return %c0_i32, %c0_i32_0 : i32, i32
  }
  func.func @transform_2(%arg0: i32) -> (i32, i32) {
    %c0_i32 = arith.constant 0 : i32
    %c0_i32_0 = arith.constant 0 : i32
    %c0_i32_1 = arith.constant 0 : i32
    return %c0_i32, %c0_i32_0 : i32, i32
  }
  func.func @transform_3(%arg0: i32) -> (i32, i32) {
    %c0_i32 = arith.constant 0 : i32
    %c0_i32_0 = arith.constant 0 : i32
    %c0_i32_1 = arith.constant 0 : i32
    return %c0_i32, %c0_i32_0 : i32, i32
  }
  func.func @transform_4(%arg0: i32) -> (i32, i32) {
    %c0_i32 = arith.constant 0 : i32
    %c0_i32_0 = arith.constant 0 : i32
    %c0_i32_1 = arith.constant 0 : i32
    return %c0_i32, %c0_i32_0 : i32, i32
  }
  func.func @transform_5(%arg0: i32) -> (i32, i32) {
    %c0_i32 = arith.constant 0 : i32
    %c0_i32_0 = arith.constant 0 : i32
    %c0_i32_1 = arith.constant 0 : i32
    return %c0_i32, %c0_i32_0 : i32, i32
  }
  func.func @transform_6(%arg0: i32) -> (i32, i32) {
    %c0_i32 = arith.constant 0 : i32
    %c0_i32_0 = arith.constant 0 : i32
    %c0_i32_1 = arith.constant 0 : i32
    return %c0_i32, %c0_i32_0 : i32, i32
  }
  func.func @transform_7(%arg0: i32) -> (i32, i32) {
    %c0_i32 = arith.constant 0 : i32
    %c0_i32_0 = arith.constant 0 : i32
    %c0_i32_1 = arith.constant 0 : i32
    return %c0_i32, %c0_i32_0 : i32, i32
  }
  func.func @transform_8(%arg0: i32) -> (i32, i32) {
    %c0_i32 = arith.constant 0 : i32
    %c0_i32_0 = arith.constant 0 : i32
    %c0_i32_1 = arith.constant 0 : i32
    return %c0_i32, %c0_i32_0 : i32, i32
  }
  func.func @transform_9(%arg0: i32) -> (i32, i32) {
    %c0_i32 = arith.constant 0 : i32
    %c0_i32_0 = arith.constant 0 : i32
    %c0_i32_1 = arith.constant 0 : i32
    return %c0_i32, %c0_i32_0 : i32, i32
  }
}

</mosaic_0001>

<bundles_post_ra>
// kernel: tpu_custom_call.1
= control target key start
LH: loop header
LB: loop body
LE: loop exit
PB: predicated region body
PF: predicated region fallthrough
CT: control target
= control target key end

     0   :  { %14 = vsyncpa [#allocation3], 0  ;;  %s857_s0 = inlined_call_operand.vmem [shape: f32[31,1], index: 0, kind: input, shape index: {}]   ;;  %s858_s1 = inlined_call_operand.vmem [shape: f32[1,32], index: 1, kind: input, shape index: {}]   ;;  %s859_s2 = inlined_call_operand.vmem [shape: f32[1,32], index: 2, kind: input, shape index: {}]   ;;  %s860_s3 = inlined_call_operand.vmem [shape: f32[32,32], index: 3, kind: input, shape index: {}]   ;;  %s861_s4 = inlined_call_operand.vmem [shape: f32[1,32], index: 4, kind: input, shape index: {}]   ;;  %s862_s5 = inlined_call_operand.hbm [shape: f32[32,32], index: 5, kind: input, shape index: {}]   ;;  %s863_s6 = inlined_call_operand.vmem [shape: f32[1,32], index: 6, kind: input, shape index: {}]   ;;  %s864_s7 = inlined_call_operand.vmem [shape: f32[8,32], index: 7, kind: input, shape index: {}]   ;;  %s865_s8 = inlined_call_operand.vmem [shape: f32[8,1], index: 8, kind: input, shape index: {}]   ;;  %s866_s9 = inlined_call_operand.hbm [shape: f32[8,31], index: 9, kind: output, shape index: {}]  }
   0x1   :  { %15 = vsyncpa [#allocation4], 0  ;;  %s722_s30 = smov [#allocation2]   ;;  %s674_s13 = scalar_lea.hbm %s862_s5, 512 }
   0x2   :  { %s31_s10 = sshll.u32 %s722_s30, 4  ;;  %p675_p0 = scmp.ne.s32.totalorder %s862_s5, %s674_s13  ;;  %s32_s10 = int_to_ptr.vmem [resolvable:$true] %s31_s10 }
   0x3   :  { %p678_p1 = scmp.lt.u32.totalorder %s674_s13, %s862_s5 }
   0x5   :  { %p680_p2 = pnand %p678_p1, %p675_p0 }
   0x7   :  { %683 = shalt.err (!%p680_p2)
}
   0x8   :  { %s684_s18 = scalar_lea.vmem %s32_s10, 512  ;;  %p689_p4 = scmp.lt.s32.totalorder %s32_s10, %s32_s10 }
   0x9   :  { %p685_p3 = scmp.ne.s32.totalorder %s32_s10, %s684_s18  ;;  %p690_p5 = scmp.lt.s32.totalorder %s684_s18, %s684_s18 }
   0xb   :  { %p691_p6 = por %p690_p5, %p689_p4 }
   0xd   :  { %p692_p7 = pnand %p691_p6, %p685_p3 }
   0xf   :  { %695 = shalt.err (!%p692_p7)
}
  0x10   :  { %s723_s19 = smov 128   ;;  %s724_s20 = smov 8  }
  0x11   :  { %37 = dma.hbm_to_vmem [thread:$0]  %s862_s5, 512, %s32_s10, [#allocation3], %s723_s19, %s723_s19, %s724_s20  }
  0x12   :  { %718 = dma.done.wait [#allocation3], 512  }
  0x13   :  { %719 = vsyncadd [#allocation3], 4294966784  ;;  %v725_v0 = vmov 0   ;;  %v49_v1 = vld [vmem:[%s857_s0 + $0x10] sm:$0xff]  ;;  %v47_v2 = vld [vmem:[%s857_s0] sm:$0xff]  ;;  %vm132_vm0 = vcmask 261120  }
  0x14   :  { %625 = vset.pattern.permute.xlu1 %v725_v0  ;;  %624 = vset.pattern.permute.xlu0 %v725_v0  ;;  %v50_v3 = vld [vmem:[%s857_s0 + $0x18] sm:$0x7f]  ;;  %v48_v4 = vld [vmem:[%s857_s0 + $0x8] sm:$0xff]  ;;  %v395_v5 = vld [vmem:[%s865_s8] sm:$0xff]  ;;  %vm727_vm1 = vmmov 0   ;;  %s729_s22 = smov [#allocation5]  }
  0x15   :  { %64 = vperm.xlu1 %625, %v49_v1   ;;  %54 = vperm.xlu0 %624, %v47_v2   ;;  %v121_v6 = vld [vmem:[%s860_s3] sm:$0xff]  ;;  %v122_v7 = vld [vmem:[%s860_s3 + $0x8] sm:$0xff]  ;;  %v123_v9 = vld [vmem:[%s860_s3 + $0x10] sm:$0xff]  ;;  %s494_s23 = sshll.u32 %s729_s22, 4  ;;  %vm486_vm3 = vcmask 252928   ;;  %s495_s23 = int_to_ptr.vmem [resolvable:$true] %s494_s23 }
  0x16   :  { %v592_v8 = vpack.c.bf16 %v122_v7, %v121_v6  ;;  %v124_v10 = vld [vmem:[%s860_s3 + $0x18] sm:$0xff]  ;;  %v503_v12 = vld [vmem:[%s858_s1] ss:$0 sm:$0xff]  ;;  %v259_v47 = vld [vmem:[#allocation2 + $0x8] sm:$0xff]  ;;  %s696_s24 = scalar_lea.vmem %s495_s23, 128  ;;  %p701_p9 = scmp.lt.s32.totalorder %s495_s23, %s495_s23 }
  0x17   :  { %v596_v11 = vpack.c.bf16 %v124_v10, %v123_v9  ;;  %v504_v13 = vld [vmem:[%s859_s2] ss:$0 sm:$0xff]  ;;  %v260_v49 = vld [vmem:[#allocation2 + $0x10] sm:$0xff]  ;;  %v261_v50 = vld [vmem:[#allocation2 + $0x18] sm:$0xff]  ;;  %p697_p8 = scmp.ne.s32.totalorder %s495_s23, %s696_s24  ;;  %p702_p10 = scmp.lt.s32.totalorder %s696_s24, %s696_s24 }
  0x18   :  { %593 = vmatprep.subr.bf16.mxu1 %v592_v8  ;;  %v258_v46 = vld [vmem:[#allocation2] sm:$0xff]  ;;  %v604_v51 = vpack.c.bf16 %v261_v50, %v260_v49  ;;  %vm610_vm2 = vmpackc.low %vm132_vm0, %vm132_vm0 }
  0x19   :  { %69 = vperm.xlu1 %625, %v50_v3   ;;  %59 = vperm.xlu0 %624, %v48_v4   ;;  %v600_v48 = vpack.c.bf16 %v259_v47, %v258_v46  ;;  %v509_v52 = vld [vmem:[%s861_s4] ss:$0 sm:$0xff]  ;;  %p703_p11 = por %p702_p10, %p701_p9 }
  0x1a   :  { %595 = vmatpush3.bf16.msra.mxu1 %v592_v8  ;;  %v394_v50 = vld [vmem:[%s864_s7] sm:$0xff] }
  0x1b   :  { %597 = vmatprep.subr.bf16.mxu1 %v596_v11  ;;  %p704_p12 = pnand %p703_p11, %p697_p8 }
  0x1d   :  { %398 = vperm.xlu0 %624, %v395_v5  }
  0x1e   :  { %599 = vmatpush3.bf16.msra.mxu1 %v596_v11 }
  0x1f   :  { %601 = vmatprep.subr.bf16.mxu1 %v600_v48 }
  0x94   :  { %v65_v14 = vpop.permute.xlu1 %64  ;;  %v55_v15 = vpop.permute.xlu0 %54 }
  0x95   :  { %v80_v16 = vmul.f32 %v503_v12, %v65_v14  ;;  %v78_v17 = vmul.f32 %v503_v12, %v55_v15 }
  0x97   :  { %v91_v18 = vadd.f32 %v504_v13, %v80_v16  ;;  %v89_v19 = vadd.f32 %v504_v13, %v78_v17  ;;  %v726_v17 = vmov 0.0|0.0  }
  0x98   :  { %v70_v20 = vpop.permute.xlu1 %69  ;;  %v60_v21 = vpop.permute.xlu0 %59  ;;  %608 = vmatprep.subr.bf16.mxu0 %v726_v17 }
  0x99   :  { %v507_v22 = vmul.f32 -1.442695, %v91_v18  ;;  %v505_v23 = vmul.f32 -1.442695, %v89_v19  ;;  %v81_v24 = vmul.f32 %v503_v12, %v70_v20  ;;  %v79_v25 = vmul.f32 %v503_v12, %v60_v21 }
  0x9b   :  { %626 = vpow2.f32 %v507_v22  ;;  %v92_v26 = vadd.f32 %v504_v13, %v81_v24  ;;  %v90_v27 = vadd.f32 %v504_v13, %v79_v25 }
  0x9c   :  { %628 = vpow2.f32 %v505_v23 }
  0x9d   :  { %v508_v28 = vmul.f32 -1.442695, %v92_v26  ;;  %v506_v29 = vmul.f32 -1.442695, %v90_v27 }
  0x9f   :  { %630 = vpow2.f32 %v508_v28 }
  0xa0   :  { %632 = vpow2.f32 %v506_v29 }
  0xa5   :  { %v627_v30 = vpop.eup %626 }
  0xa6   :  { %v629_v31 = vpop.eup %628  ;;  %v107_v33 = vadd.f32 1.0, %v627_v30 }
  0xa7   :  { %v105_v32 = vadd.f32 1.0, %v629_v31 }
  0xa9   :  { %v631_v34 = vpop.eup %630  ;;  %634 = vrcp.f32 %v105_v32 }
  0xaa   :  { %v633_v35 = vpop.eup %632  ;;  %v108_v36 = vadd.f32 1.0, %v631_v34  ;;  %636 = vrcp.f32 %v107_v33 }
  0xab   :  { %v106_v37 = vadd.f32 1.0, %v633_v35 }
  0xad   :  { %638 = vrcp.f32 %v106_v37 }
  0xae   :  { %640 = vrcp.f32 %v108_v36 }
  0xb3   :  { %v635_v38 = vpop.eup %634 }
  0xb4   :  { %v117_v39 = vmul.f32 %v635_v38, %v89_v19  ;;  %v637_v40 = vpop.eup %636  ;;  %v518_v19 = vld [vmem:[%s863_s6] ss:$0 sm:$0xff] }
  0xb5   :  { %v119_v44 = vmul.f32 %v637_v40, %v91_v18  ;;  %v728_v18 = vmov 0.0  }
  0xb6   :  { %561 = vmatprep.mubr.msk.f32.mxu1 %vm132_vm0, %v117_v39  ;;  %589 = vmatprep.mubr.msk.f32.mxu0 %vm727_vm1, %v728_v18 }
  0xb7   :  { %v639_v41 = vpop.eup %638 }
  0xb8   :  { %v118_v42 = vmul.f32 %v639_v41, %v90_v27  ;;  %v641_v43 = vpop.eup %640 }
  0xb9   :  { %v120_v45 = vmul.f32 %v641_v43, %v92_v26 }
  0xba   :  { %562 = vmatmul.mubr.msk.f32.vlgmr.msra.gmra.mrb[0].mxu1 %vm132_vm0, %v118_v42 }
  0xbb   :  { %564 = vmatprep.mubr.msk.f32.mxu1 %vm132_vm0, %v119_v44  ;;  %603 = vmatpush3.bf16.msra.mxu1 %v600_v48 }
  0xbc   :  { %605 = vmatprep.subr.bf16.mxu1 %v604_v51 }
  0xbe   :  { %565 = vmatmul.mubr.msk.f32.gmra.mrb[2].mxu1 %vm132_vm0, %v120_v45 }
  0xbf   :  { %607 = vmatpush3.bf16.msra.mxu1 %v604_v51  ;;  %v399_v51 = vpop.permute.xlu0 %398 }
 0x18d   :  { %v563_v53 = vpop.f32.mrb[0].mxu1 }
 0x18e   :  { %v217_v54 = vadd.f32 %v563_v53, %v509_v52  ;;  %v211_v55 = vpop.f32.mrb[1].mxu1 }
 0x18f   :  { %v212_v56 = vadd.f32 %v509_v52, %v211_v55 }
 0x190   :  { %v515_v57 = vmul.f32 -1.442695, %v217_v54 }
 0x191   :  { %v514_v58 = vmul.f32 -1.442695, %v212_v56  ;;  %v566_v59 = vpop.f32.mrb[2].mxu1 }
 0x192   :  { %642 = vpow2.f32 %v515_v57  ;;  %v227_v60 = vadd.f32 %v566_v59, %v509_v52  ;;  %v221_v61 = vpop.f32.mrb[3].mxu1 }
 0x193   :  { %644 = vpow2.f32 %v514_v58  ;;  %v222_v62 = vadd.f32 %v509_v52, %v221_v61 }
 0x194   :  { %v517_v63 = vmul.f32 -1.442695, %v227_v60 }
 0x195   :  { %v516_v0 = vmul.f32 -1.442695, %v222_v62 }
 0x196   :  { %646 = vpow2.f32 %v517_v63 }
 0x197   :  { %648 = vpow2.f32 %v516_v0 }
 0x19c   :  { %v643_v1 = vpop.eup %642 }
 0x19d   :  { %v645_v2 = vpop.eup %644  ;;  %v243_v3 = vadd.f32 1.0, %v643_v1 }
 0x19e   :  { %v242_v4 = vadd.f32 1.0, %v645_v2 }
 0x19f   :  { %650 = vrcp.f32 %v243_v3 }
 0x1a0   :  { %v647_v5 = vpop.eup %646  ;;  %652 = vrcp.f32 %v242_v4 }
 0x1a1   :  { %v649_v6 = vpop.eup %648  ;;  %v245_v7 = vadd.f32 1.0, %v647_v5 }
 0x1a2   :  { %v244_v8 = vadd.f32 1.0, %v649_v6 }
 0x1a3   :  { %654 = vrcp.f32 %v245_v7 }
 0x1a4   :  { %656 = vrcp.f32 %v244_v8 }
 0x1a9   :  { %v651_v9 = vpop.eup %650 }
 0x1aa   :  { %v653_v10 = vpop.eup %652  ;;  %v255_v12 = vmul.f32 %v651_v9, %v217_v54 }
 0x1ab   :  { %v254_v11 = vmul.f32 %v653_v10, %v212_v56 }
 0x1ad   :  { %v655_v13 = vpop.eup %654  ;;  %575 = vmatprep.mubr.msk.f32.mxu1 %vm132_vm0, %v254_v11 }
 0x1ae   :  { %v657_v14 = vpop.eup %656  ;;  %576 = vmatmul.mubr.msk.f32.vlgmr.msra.gmra.mrb[4].mxu1 %vm132_vm0, %v255_v12  ;;  %v257_v16 = vmul.f32 %v655_v13, %v227_v60 }
 0x1af   :  { %v256_v15 = vmul.f32 %v657_v14, %v222_v62 }
 0x1b1   :  { %578 = vmatprep.mubr.msk.f32.mxu1 %vm132_vm0, %v256_v15 }
 0x1b2   :  { %579 = vmatmul.mubr.msk.f32.gmra.mrb[6].mxu1 %vm132_vm0, %v257_v16 }
 0x281   :  { %v577_v20 = vpop.f32.mrb[4].mxu1 }
 0x282   :  { %v353_v21 = vadd.f32 %v577_v20, %v518_v19  ;;  %v347_v22 = vpop.f32.mrb[5].mxu1 }
 0x283   :  { %v348_v23 = vadd.f32 %v518_v19, %v347_v22 }
 0x284   :  { %v524_v24 = vmul.f32 -1.442695, %v353_v21 }
 0x285   :  { %v523_v25 = vmul.f32 -1.442695, %v348_v23  ;;  %v580_v26 = vpop.f32.mrb[6].mxu1 }
 0x286   :  { %658 = vpow2.f32 %v524_v24  ;;  %v363_v27 = vadd.f32 %v580_v26, %v518_v19  ;;  %v357_v28 = vpop.f32.mrb[7].mxu1 }
 0x287   :  { %660 = vpow2.f32 %v523_v25  ;;  %v358_v29 = vadd.f32 %v518_v19, %v357_v28 }
 0x288   :  { %v526_v30 = vmul.f32 -1.442695, %v363_v27 }
 0x289   :  { %v525_v31 = vmul.f32 -1.442695, %v358_v29 }
 0x28a   :  { %662 = vpow2.f32 %v526_v30 }
 0x28b   :  { %664 = vpow2.f32 %v525_v31 }
 0x290   :  { %v659_v32 = vpop.eup %658 }
 0x291   :  { %v661_v33 = vpop.eup %660  ;;  %v379_v34 = vadd.f32 1.0, %v659_v32 }
 0x292   :  { %v378_v35 = vadd.f32 1.0, %v661_v33 }
 0x293   :  { %666 = vrcp.f32 %v379_v34 }
 0x294   :  { %v663_v36 = vpop.eup %662  ;;  %668 = vrcp.f32 %v378_v35 }
 0x295   :  { %v665_v37 = vpop.eup %664  ;;  %v381_v38 = vadd.f32 1.0, %v663_v36 }
 0x296   :  { %v380_v39 = vadd.f32 1.0, %v665_v37 }
 0x297   :  { %670 = vrcp.f32 %v381_v38 }
 0x298   :  { %672 = vrcp.f32 %v380_v39 }
 0x29d   :  { %v667_v40 = vpop.eup %666 }
 0x29e   :  { %v669_v41 = vpop.eup %668  ;;  %v391_v42 = vmul.f32 %v667_v40, %v353_v21 }
 0x29f   :  { %v390_v43 = vmul.f32 %v669_v41, %v348_v23 }
 0x2a1   :  { %v671_v44 = vpop.eup %670  ;;  %v609_v45 = vpack.c.bf16 %v391_v42, %v390_v43 }
 0x2a2   :  { %v673_v46 = vpop.eup %672  ;;  %v393_v47 = vmul.f32 %v671_v44, %v363_v27 }
 0x2a3   :  { %v392_v48 = vmul.f32 %v673_v46, %v358_v29  ;;  %611 = vmatpush3.bf16.xpose.msk.msra.mxu0 %vm610_vm2, %v609_v45 }
 0x2a4   :  { %612 = vmatprep.subr.bf16.mxu0 %v726_v17 }
 0x2a5   :  { %v613_v49 = vpack.c.bf16 %v393_v47, %v392_v48 }
 0x2ab   :  { %615 = vmatpush3.bf16.xpose.msk.msra.mxu0 %vm610_vm2, %v613_v49 }
 0x2b2   :  { %590 = vmatmul.mubr.msk.f32.vlgmr.msra.gmra.mrb[0].mxu0 %vm132_vm0, %v394_v50 }
 0x385   :  { %v482_v52 = vpop.f32.mrb[0].mxu0 }
 0x386   :  { %v483_v53 = vadd.f32 %v482_v52, %v399_v51  ;;  %v591_v54 = vpop.f32.mrb[1].mxu0 }
 0x388   :  { %487 = vst.msk [vmem:[#allocation5] sm:$0xff] %vm486_vm3, %v483_v53 }
 0x389   :  { %707 = shalt.err (!%p704_p12)
}
 0x38a   :  { %s708_s26 = scalar_lea.hbm %s866_s9, 128 }
 0x38b   :  { %p709_p13 = scmp.ne.s32.totalorder %s866_s9, %s708_s26  ;;  %p712_p0 = scmp.lt.u32.totalorder %s708_s26, %s866_s9 }
 0x38d   :  { %p714_p1 = pnand %p712_p0, %p709_p13 }
 0x38f   :  { %717 = shalt.err (!%p714_p1)
}
 0x390   :  { %497 = dma.vmem_to_hbm [thread:$0]  %s495_s23, 128, %s866_s9, [#allocation4]  }
 0x391   :  { %720 = dma.done.wait [#allocation4], 128  }
 0x392   :  { %721 = vsyncadd [#allocation4], 4294967168 }
 0x393   :  { %501 = vsyncpa [#allocation3], 1 }
 0x394   :  { %502 = vsyncpa [#allocation4], 1 }

</bundles_post_ra>
